<compile_context>
chip_gen: v7x
topology: tpu7x:2x2x1
jax: 0.10.0
libtpu: 0.0.40
codegen_flags: <defaults>
</compile_context>

<pallas_src>
import math

import numpy as np
import jax
import jax.numpy as jnp
from jax.experimental import pallas as pl
from jax.experimental.pallas import tpu as pltpu


def _global_filter_kernel(x_ref, wre_ref, wim_ref, fwd_ref, invr_ref, invi_ref,
                          o_ref):
    """One (channel-tile, batch-tile) block: y = irfft2(rfft2(x) * W)."""
    tb = x_ref.shape[0]               # images per grid step (static)
    sp_pad = wre_ref.shape[0]         # padded half-spectrum size a*(b//2+1)

    # Operators / filter loaded once per step and reused for every image.
    fwd = fwd_ref[...]                # (2*sp_pad, N)  forward DFT operator
    invr = invr_ref[...]              # (N, sp_pad)    inverse op, Re input
    invi = invi_ref[...]              # (N, sp_pad)    inverse op, Im input
    wre = wre_ref[...]                # (sp_pad, tc)   filter, real part
    wim = wim_ref[...]                # (sp_pad, tc)   filter, imag part

    for img in range(tb):             # static unroll; tb is small
        # ---- forward 2-D rDFT: one wide MXU matmul, channels on lanes ------
        spec = jnp.dot(fwd, x_ref[img], preferred_element_type=jnp.float32)
        sre = spec[:sp_pad]           # sublane-aligned static slices (cheap)
        sim = spec[sp_pad:]
        # ---- elementwise complex filter multiply (f32 on VPU) --------------
        zre = sre * wre - sim * wim
        zim = sre * wim + sim * wre
        # ---- inverse transform: two accumulating wide matmuls --------------
        o_ref[img] = (jnp.dot(invr, zre, preferred_element_type=jnp.float32)
                      + jnp.dot(invi, zim, preferred_element_type=jnp.float32))


def _build_operators(a, b, sp_pad):
    """Dense f32 DFT operators sampled directly from np.fft ('ortho' norm)."""
    n = a * b
    bh = b // 2 + 1
    sp = a * bh
    # Forward: x (n,) -> [Re(rfft2 x); Im(rfft2 x)]  (2*sp_pad,)
    eye_x = np.eye(n, dtype=np.float64).reshape(n, a, b)
    f = np.fft.rfft2(eye_x, axes=(1, 2), norm="ortho").reshape(n, sp)
    fwd = np.zeros((2 * sp_pad, n), dtype=np.float32)
    fwd[:sp] = f.real.T
    fwd[sp_pad:sp_pad + sp] = f.imag.T
    # Inverse: (z_re, z_im) (sp,) each -> irfft2 output (n,)
    eye_s = np.eye(sp, dtype=np.complex128).reshape(sp, a, bh)
    inv_r = np.fft.irfft2(eye_s, s=(a, b), axes=(1, 2), norm="ortho").reshape(sp, n)
    inv_i = np.fft.irfft2(1j * eye_s, s=(a, b), axes=(1, 2),
                          norm="ortho").reshape(sp, n)
    invr = np.zeros((n, sp_pad), dtype=np.float32)
    invi = np.zeros((n, sp_pad), dtype=np.float32)
    invr[:, :sp] = inv_r.T
    invi[:, :sp] = inv_i.T
    return fwd, invr, invi


def global_filter(x, complex_weight, spatial_size=None):
    """Pallas implementation of GlobalFilter.forward.

    x:              (B, N, C) array.
    complex_weight: (h, h//2+1, C, 2) float32 parameter (real/imag stacked).
    """
    B, N, C = x.shape
    if spatial_size is None:
        a = b = int(math.sqrt(N))
    else:
        a, b = spatial_size
    h, bh, dim, two = complex_weight.shape
    assert a == h and b == h and dim == C and bh == h // 2 + 1 and two == 2
    assert a * b == N

    sp = a * bh
    sp_pad = ((sp + 7) // 8) * 8          # sublane-align the spectral dim

    # ---- channel padding: every lane tile is a full multiple of 128 --------
    cp = ((C + 127) // 128) * 128
    x_p = x.astype(jnp.float32)
    if cp != C:
        x_p = jnp.pad(x_p, ((0, 0), (0, 0), (0, cp - C)))

    # Filter in (spectral, channel) layout; padded rows/channels are zero so
    # they contribute nothing through the (zero-padded) inverse operators.
    w = complex_weight.astype(jnp.float32).reshape(sp, C, 2)
    w_re = jnp.pad(w[..., 0], ((0, sp_pad - sp), (0, cp - C)))
    w_im = jnp.pad(w[..., 1], ((0, sp_pad - sp), (0, cp - C)))

    fwd_np, invr_np, invi_np = _build_operators(a, b, sp_pad)
    fwd = jnp.asarray(fwd_np)
    invr = jnp.asarray(invr_np)
    invi = jnp.asarray(invi_np)

    # ---- batch tiling: amortize per-grid-step overhead when a*b is small ---
    tb = max(1, 256 // N)
    tb = min(tb, B)
    while B % tb:
        tb -= 1

    # ---- chip-aware channel tile + VMEM limit -------------------------------
    try:
        chip_vmem = int(pltpu.get_tpu_info().vmem_capacity_bytes)
    except Exception:
        chip_vmem = 64 * 1024 * 1024      # conservative (v7x per-core VMEM)

    def vmem_estimate(tc_):
        blk_io = tb * N * tc_ * 4                       # x or out block
        blk_w = sp_pad * tc_ * 4                        # w_re / w_im block
        ops = (2 * sp_pad * N + 2 * N * sp_pad) * 4     # fwd + invr + invi
        interm = 4 * (2 * sp_pad * tc_ * 4)             # spec/z/partials headroom
        return 2 * (2 * blk_io + 2 * blk_w) + 2 * ops + interm

    if cp % 256 == 0 and vmem_estimate(256) <= chip_vmem // 2:
        tc = 256                      # good MXU-N fill on v6e/v7x
    else:
        tc = 128                      # safe lane-dense tile everywhere
    n_ct = cp // tc

    # Keep >= 2 grid steps when the batch allows it (both v7x TensorCores).
    while tb > 1 and n_ct * (B // tb) < 2:
        tb -= 1
        while B % tb:
            tb -= 1
    n_bt = B // tb

    vmem_limit = int(min(chip_vmem * 3 // 4,
                         max(32 * 1024 * 1024, 2 * vmem_estimate(tc))))

    grid_spec = pltpu.PrefetchScalarGridSpec(
        num_scalar_prefetch=0,
        # C-tiles outer / batch inner: the filter and operator blocks (whose
        # indices do not depend on the batch axis) stay resident in VMEM
        # across consecutive grid steps.
        grid=(n_ct, n_bt),
        in_specs=[
            pl.BlockSpec((tb, N, tc), lambda i, j: (j, 0, i)),      # x
            pl.BlockSpec((sp_pad, tc), lambda i, j: (0, i)),        # w_re
            pl.BlockSpec((sp_pad, tc), lambda i, j: (0, i)),        # w_im
            pl.BlockSpec((2 * sp_pad, N), lambda i, j: (0, 0)),     # fwd
            pl.BlockSpec((N, sp_pad), lambda i, j: (0, 0)),         # invr
            pl.BlockSpec((N, sp_pad), lambda i, j: (0, 0)),         # invi
        ],
        out_specs=pl.BlockSpec((tb, N, tc), lambda i, j: (j, 0, i)),
    )
    y = pl.pallas_call(
        _global_filter_kernel,
        out_shape=jax.ShapeDtypeStruct((B, N, cp), jnp.float32),
        grid_spec=grid_spec,
        compiler_params=pltpu.CompilerParams(
            dimension_semantics=("parallel", "parallel"),
            vmem_limit_bytes=vmem_limit),
    )(x_p, w_re, w_im, fwd, invr, invi)

    if cp != C:
        y = y[:, :, :C]
    return y


if __name__ == "__main__":
    B, h, C = 2, 8, 128          # GlobalFilter(dim=128, h=8, w=5); N = h*h
    N = h * h

    key = jax.random.PRNGKey(0)
    kx, kw = jax.random.split(key)
    x = jax.random.normal(kx, (B, N, C), dtype=jnp.float32)
    complex_weight = 0.02 * jax.random.normal(
        kw, (h, h // 2 + 1, C, 2), dtype=jnp.float32)

    y = jax.block_until_ready(global_filter(x, complex_weight))

    # Plain-JAX reference mirroring the PyTorch forward exactly.
    a = b = h
    x_img = x.reshape(B, a, b, C).astype(jnp.float32)
    wc = complex_weight[..., 0] + 1j * complex_weight[..., 1]
    xf = jnp.fft.rfft2(x_img, axes=(1, 2), norm="ortho")
    y_ref = jnp.fft.irfft2(xf * wc[None], s=(a, b), axes=(1, 2), norm="ortho")
    y_ref = y_ref.reshape(B, N, C)

    err = float(jnp.max(jnp.abs(y - y_ref)))
    assert jnp.allclose(y, y_ref, atol=1e-3, rtol=1e-2), err
    print("KERNEL_OK")
</pallas_src>

<mosaic_0001>
module attributes {stable_mosaic.version = 11 : i64} {
  func.func @_global_filter_kernel(%arg0: i32, %arg1: i32, %arg2: memref<1x64x128xf32, #tpu.memory_space<vmem>>, %arg3: memref<40x128xf32, #tpu.memory_space<vmem>>, %arg4: memref<40x128xf32, #tpu.memory_space<vmem>>, %arg5: memref<80x64xf32, #tpu.memory_space<vmem>>, %arg6: memref<64x40xf32, #tpu.memory_space<vmem>>, %arg7: memref<64x40xf32, #tpu.memory_space<vmem>>, %arg8: memref<1x64x128xf32, #tpu.memory_space<vmem>>) attributes {dimension_semantics = [#tpu.dimension_semantics<parallel>, #tpu.dimension_semantics<parallel>], iteration_bounds = array<i64: 1, 2>, scalar_prefetch = 0 : i64, scratch_operands = 0 : i64, tpu.core_type = #tpu.core_type<tc>, window_params = [{transform_indices = @transform_0, window_bounds = array<i64: 1, 64, 128>}, {transform_indices = @transform_1, window_bounds = array<i64: 40, 128>}, {transform_indices = @transform_2, window_bounds = array<i64: 40, 128>}, {pipeline_mode = #tpu.pipeline_mode<synchronous>, transform_indices = @transform_3, window_bounds = array<i64: 80, 64>}, {pipeline_mode = #tpu.pipeline_mode<synchronous>, transform_indices = @transform_4, window_bounds = array<i64: 64, 40>}, {pipeline_mode = #tpu.pipeline_mode<synchronous>, transform_indices = @transform_5, window_bounds = array<i64: 64, 40>}, {transform_indices = @transform_6, window_bounds = array<i64: 1, 64, 128>}]} {
    %c0 = arith.constant 0 : index
    %c0_0 = arith.constant 0 : index
    %0 = vector.load %arg5[%c0, %c0_0] : memref<80x64xf32, #tpu.memory_space<vmem>>, vector<80x64xf32>
    %c0_1 = arith.constant 0 : index
    %c0_2 = arith.constant 0 : index
    %1 = vector.load %arg6[%c0_1, %c0_2] : memref<64x40xf32, #tpu.memory_space<vmem>>, vector<64x40xf32>
    %c0_3 = arith.constant 0 : index
    %c0_4 = arith.constant 0 : index
    %2 = vector.load %arg7[%c0_3, %c0_4] : memref<64x40xf32, #tpu.memory_space<vmem>>, vector<64x40xf32>
    %c0_5 = arith.constant 0 : index
    %c0_6 = arith.constant 0 : index
    %3 = vector.load %arg3[%c0_5, %c0_6] : memref<40x128xf32, #tpu.memory_space<vmem>>, vector<40x128xf32>
    %c0_7 = arith.constant 0 : index
    %c0_8 = arith.constant 0 : index
    %4 = vector.load %arg4[%c0_7, %c0_8] : memref<40x128xf32, #tpu.memory_space<vmem>>, vector<40x128xf32>
    %c0_9 = arith.constant 0 : index
    %c0_10 = arith.constant 0 : index
    %c0_11 = arith.constant 0 : index
    %5 = vector.load %arg2[%c0_9, %c0_10, %c0_11] : memref<1x64x128xf32, #tpu.memory_space<vmem>>, vector<1x64x128xf32>
    %6 = vector.shape_cast %5 : vector<1x64x128xf32> to vector<64x128xf32>
    %cst = arith.constant dense<0.000000e+00> : vector<80x128xf32>
    %7 = tpu.matmul %0, %6, %cst {dimension_numbers = #tpu.dot_dimension_numbers<[1], [0], [0], [1], [0, 0, 1, 1], [], []>} : vector<80x64xf32>, vector<64x128xf32>, vector<80x128xf32> -> vector<80x128xf32>
    %8 = vector.extract_strided_slice %7 {offsets = [0, 0], sizes = [40, 128], strides = [1, 1]} : vector<80x128xf32> to vector<40x128xf32>
    %9 = vector.extract_strided_slice %7 {offsets = [40, 0], sizes = [40, 128], strides = [1, 1]} : vector<80x128xf32> to vector<40x128xf32>
    %10 = arith.mulf %8, %3 : vector<40x128xf32>
    %11 = arith.mulf %9, %4 : vector<40x128xf32>
    %12 = arith.subf %10, %11 : vector<40x128xf32>
    %13 = arith.mulf %8, %4 : vector<40x128xf32>
    %14 = arith.mulf %9, %3 : vector<40x128xf32>
    %15 = arith.addf %13, %14 : vector<40x128xf32>
    %cst_12 = arith.constant dense<0.000000e+00> : vector<64x128xf32>
    %16 = tpu.matmul %1, %12, %cst_12 {dimension_numbers = #tpu.dot_dimension_numbers<[1], [0], [0], [1], [0, 0, 1, 1], [], []>} : vector<64x40xf32>, vector<40x128xf32>, vector<64x128xf32> -> vector<64x128xf32>
    %cst_13 = arith.constant dense<0.000000e+00> : vector<64x128xf32>
    %17 = tpu.matmul %2, %15, %cst_13 {dimension_numbers = #tpu.dot_dimension_numbers<[1], [0], [0], [1], [0, 0, 1, 1], [], []>} : vector<64x40xf32>, vector<40x128xf32>, vector<64x128xf32> -> vector<64x128xf32>
    %18 = arith.addf %16, %17 : vector<64x128xf32>
    %c0_14 = arith.constant 0 : index
    %c0_15 = arith.constant 0 : index
    %c0_16 = arith.constant 0 : index
    %19 = vector.load %arg8[%c0_14, %c0_15, %c0_16] : memref<1x64x128xf32, #tpu.memory_space<vmem>>, vector<1x64x128xf32>
    %20 = vector.shape_cast %19 : vector<1x64x128xf32> to vector<64x128xf32>
    %21 = vector.shape_cast %18 : vector<64x128xf32> to vector<1x64x128xf32>
    tpu.vector_store %arg8[%c0_14, %c0_15, %c0_16], %21 {strides = array<i32>} : memref<1x64x128xf32, #tpu.memory_space<vmem>>, vector<1x64x128xf32>,
    return
  }
  func.func @transform_0(%arg0: i32, %arg1: i32) -> (i32, i32, i32) {
    %c0_i32 = arith.constant 0 : i32
    %c0_i32_0 = arith.constant 0 : i32
    return %arg1, %c0_i32, %arg0 : i32, i32, i32
  }
  func.func @transform_1(%arg0: i32, %arg1: i32) -> (i32, i32) {
    %c0_i32 = arith.constant 0 : i32
    %c0_i32_0 = arith.constant 0 : i32
    return %c0_i32, %arg0 : i32, i32
  }
  func.func @transform_2(%arg0: i32, %arg1: i32) -> (i32, i32) {
    %c0_i32 = arith.constant 0 : i32
    %c0_i32_0 = arith.constant 0 : i32
    return %c0_i32, %arg0 : i32, i32
  }
  func.func @transform_3(%arg0: i32, %arg1: i32) -> (i32, i32) {
    %c0_i32 = arith.constant 0 : i32
    %c0_i32_0 = arith.constant 0 : i32
    %c0_i32_1 = arith.constant 0 : i32
    return %c0_i32, %c0_i32_0 : i32, i32
  }
  func.func @transform_4(%arg0: i32, %arg1: i32) -> (i32, i32) {
    %c0_i32 = arith.constant 0 : i32
    %c0_i32_0 = arith.constant 0 : i32
    %c0_i32_1 = arith.constant 0 : i32
    return %c0_i32, %c0_i32_0 : i32, i32
  }
  func.func @transform_5(%arg0: i32, %arg1: i32) -> (i32, i32) {
    %c0_i32 = arith.constant 0 : i32
    %c0_i32_0 = arith.constant 0 : i32
    %c0_i32_1 = arith.constant 0 : i32
    return %c0_i32, %c0_i32_0 : i32, i32
  }
  func.func @transform_6(%arg0: i32, %arg1: i32) -> (i32, i32, i32) {
    %c0_i32 = arith.constant 0 : i32
    %c0_i32_0 = arith.constant 0 : i32
    return %arg1, %c0_i32, %arg0 : i32, i32, i32
  }
}

</mosaic_0001>

<bundles_post_ra>
// kernel: tpu_custom_call.1
= control target key start
LH: loop header
LB: loop body
LE: loop exit
PB: predicated region body
PF: predicated region fallthrough
CT: control target
= control target key end

     0   :  { %11 = vsyncpa [#allocation3], 0  ;;  %s1551_s0 = inlined_call_operand.vmem [shape: f32[2,64,128], index: 0, kind: input, shape index: {}]   ;;  %s1552_s1 = inlined_call_operand.vmem [shape: f32[40,128], index: 1, kind: input, shape index: {}]   ;;  %s1553_s2 = inlined_call_operand.vmem [shape: f32[40,128], index: 2, kind: input, shape index: {}]   ;;  %s1554_s3 = inlined_call_operand.vmem [shape: f32[80,64], index: 3, kind: input, shape index: {}]   ;;  %s1555_s4 = inlined_call_operand.vmem [shape: f32[64,40], index: 4, kind: input, shape index: {}]   ;;  %s1556_s5 = inlined_call_operand.vmem [shape: f32[64,40], index: 5, kind: input, shape index: {}]   ;;  %s1557_s6 = inlined_call_operand.hbm [shape: f32[2,64,128], index: 6, kind: output, shape index: {}]  }
   0x1   :  { %13 = vsyncpa [#allocation3 + $0x1], 0  ;;  %s1302_s21 = smov 0   ;;  %s1304_s22 = smov 0  }
   0x2   :  { %s1306_s23 = smov 0   ;;  %s1308_s24 = smov 0  }
   0x3   :  { %s1310_s25 = smov 0   ;;  %s1312_s26 = smov 0  }
   0x4 LB: > { %s919_s27 = sadd.s32 4294967295, %s1262_s26   ;;  %s920_s28 = sadd.s32 4294967294, %s1262_s26   ;;  %s1262_s26 = sphi %s1312_s26, %s19_s26   ;;  %s1258_s25 = sphi %s1310_s25, %s1564_s25   ;;  %s1254_s24 = sphi %s1308_s24, %s1563_s24   ;;  %s1250_s23 = sphi %s1306_s23, %s1562_s23   ;;  %s1246_s22 = sphi %s1304_s22, %s1561_s22   ;;  %s1242_s21 = sphi %s1302_s21, %s1560_s21  }
   0x5   : > { %s28_s29 = sadd.s32 1, %s1258_s25  ;;  %s183_s30 = sadd.s32 1, %s1250_s23 }
   0x6   : > { %p29_p0 = scmp.ge.s32.totalorder %s28_s29, 2  ;;  %p193_p1 = scmp.ne.s32.totalorder %s1250_s23, %s1246_s22 }
   0x7   : > { %p194_p2 = scmp.eq.s32.totalorder %s919_s27, 1  ;;  %p199_p3 = scmp.ne.s32.totalorder %s1246_s22, %s1242_s21 }
   0x8   : > { %s1566_s29 = smov (%p29_p0, %s28_s29), 0  ;;  %p200_p5 = scmp.eq.s32.totalorder %s920_s28, 1 }
   0x9   : > { %p1342_p4 = por %p194_p2, %p193_p1  ;;  %s178_s8 = ssub.s32 %s1258_s25, %s1566_s29 }
   0xa   : > { %p925_p6 = scmp.ge.s32.totalorder %s1262_s26, 1  ;;  %p181_p7 = scmp.eq.s32.totalorder %s178_s8, 0 }
   0xb   : > { %p1349_p8 = por %p200_p5, %p199_p3  ;;  %p252_p9 = scmp.lt.s32.totalorder %s1262_s26, 3 }
   0xc   : > { %s1355_s10 = scalar_select %p181_p7, %s1250_s23, %s183_s30  }
   0xd   : > { %p253_p10 = pnand %p925_p6, %p252_p9 }
   0xe   : > { %p293_p11 = scmp.lt.s32.totalorder (!%p253_p10), %s1254_s24, 1  ;;  %v309_v0 = vld [vmem:[%s1554_s3] sm:$0xff] (!%p253_p10)  ;;  %vm353_vm0 = vcmask (!%p253_p10), 523264   ;;  %v310_v13 = vld [vmem:[%s1554_s3 + $0x8] sm:$0xff] (!%p253_p10)  ;;  %v311_v14 = vld [vmem:[%s1554_s3 + $0x10] sm:$0xff] (!%p253_p10)  ;;  %vm529_vm1 = vcmask (!%p253_p10), 326656  }
   0xf   : > { %256 = sbr.rel (%p253_p10) target bundleno = 538 (0x21a), region = 44  ;;  %1022 = vmatprep.mubr.msk.f32.mxu0 (!%p253_p10), %vm353_vm0, %v309_v0  ;;  %v312_v15 = vld [vmem:[%s1554_s3 + $0x18] sm:$0xff] (!%p253_p10)  ;;  %v313_v16 = vld [vmem:[%s1554_s3 + $0x20] sm:$0xff] (!%p253_p10)  ;;  %v314_v17 = vld [vmem:[%s1554_s3 + $0x28] sm:$0xff] (!%p253_p10)  ;;  %s290_s18 = sand.u32 (!%p253_p10), 1, %s1246_s22  }
  0x10   : > { %v315_v18 = vld [vmem:[%s1554_s3 + $0x30] sm:$0xff] (!%p253_p10)  ;;  %v316_v19 = vld [vmem:[%s1554_s3 + $0x38] sm:$0xff] (!%p253_p10)  ;;  %v317_v20 = vld [vmem:[%s1554_s3 + $0x40] sm:$0xff] (!%p253_p10)  ;;  %s926_s19 = sshll.u32 (!%p253_p10), %s290_s18, 6  ;;  %s961_s27 = sshll.u32 (!%p253_p10), %s1254_s24, 10 }
  0x11   : > { %v318_v21 = vld [vmem:[%s1554_s3 + $0x48] sm:$0xff] (!%p253_p10)  ;;  %v329_v22 = vld [vmem:[%s1556_s5 + $0x10] sm:$0xff] (!%p253_p10)  ;;  %v327_v23 = vld [vmem:[%s1556_s5] sm:$0xff] (!%p253_p10)  ;;  %s292_s20 = scalar_lea.vmem (!%p253_p10), [#allocation2], %s926_s19  ;;  %s1501_s11 = scalar_lea.hbm (!%p253_p10), %s1557_s6, %s961_s27 }
  0x12   : > { %1050 = vmatprep.mubr.msk.f32.mxu1 (!%p253_p10), %vm529_vm1, %v329_v22  ;;  %v335_v28 = vld [vmem:[%s1552_s1] sm:$0xff] (!%p253_p10)  ;;  %v337_v36 = vld [vmem:[%s1552_s1 + $0x10] sm:$0xff] (!%p253_p10)  ;;  %v336_v38 = vld [vmem:[%s1552_s1 + $0x8] sm:$0xff] (!%p253_p10)  ;;  %s811_s28 = sshll.u32 (!%p253_p10), %s292_s20, 4  ;;  %s1505_s12 = scalar_lea.sflag (!%p253_p10), [#allocation3], %s290_s18  ;;  %s1503_s28 = int_to_ptr.vmem [resolvable:$true] %s811_s28 }
  0x13   : > { %v340_v29 = vld [vmem:[%s1553_s2] sm:$0xff] (!%p253_p10)  ;;  %v342_v37 = vld [vmem:[%s1553_s2 + $0x10] sm:$0xff] (!%p253_p10)  ;;  %v341_v39 = vld [vmem:[%s1553_s2 + $0x8] sm:$0xff] (!%p253_p10) }
  0x14   : > { %v338_v43 = vld [vmem:[%s1552_s1 + $0x18] sm:$0xff] (!%p253_p10)  ;;  %v339_v52 = vld [vmem:[%s1552_s1 + $0x20] sm:$0xff] (!%p253_p10)  ;;  %v321_v22 = vld [vmem:[%s1555_s4 + $0x10] sm:$0xff] (!%p253_p10) }
  0x15   : > { %v343_v44 = vld [vmem:[%s1553_s2 + $0x18] sm:$0xff] (!%p253_p10)  ;;  %v344_v53 = vld [vmem:[%s1553_s2 + $0x20] sm:$0xff] (!%p253_p10) }
  0x16   : > { %s294_s13 = scalar_select %p293_p11, %s1254_s24, 1 }
  0x17   : > { %s1184_s24 = scalar_lea.vmem %s1503_s28, 1024 }
  0x18   : > { %s960_s14 = sshll.u32 %s294_s13, 6  ;;  %p1185_p12 = scmp.ne.s32.totalorder %s1503_s28, %s1184_s24 }
  0x19   : > { %s300_s17 = scalar_lea.vmem %s1551_s0, %s960_s14  ;;  %s1264_s13 = smov [#allocation2]  }
  0x1a   : > { %v345_v1 = vld [vmem:[%s300_s17] sm:$0xff]  ;;  %v346_v2 = vld [vmem:[%s300_s17 + $0x8] sm:$0xff]  ;;  %v347_v3 = vld [vmem:[%s300_s17 + $0x10] sm:$0xff]  ;;  %p1186_p13 = pnand %p1185_p12, %p1342_p4  ;;  %s1188_s14 = sshll.u32 %s1264_s13, 4  ;;  %s1189_s14 = int_to_ptr.vmem [resolvable:$false] %s1188_s14 }
  0x1b   : > { %v1081_v4 = vpack.c.bf16 %v346_v2, %v345_v1  ;;  %v348_v5 = vld [vmem:[%s300_s17 + $0x18] sm:$0xff]  ;;  %v349_v7 = vld [vmem:[%s300_s17 + $0x20] sm:$0xff]  ;;  %v350_v8 = vld [vmem:[%s300_s17 + $0x28] sm:$0xff]  ;;  %s1190_s15 = scalar_lea.vmem %s1189_s14, 2048  ;;  %p1191_p1 = scmp.lt.s32.totalorder %s1503_s28, %s1189_s14 }
  0x1c   : > { %v1085_v6 = vpack.c.bf16 %v348_v5, %v347_v3  ;;  %v1089_v9 = vpack.c.bf16 %v350_v8, %v349_v7  ;;  %v351_v10 = vld [vmem:[%s300_s17 + $0x30] sm:$0xff]  ;;  %v352_v11 = vld [vmem:[%s300_s17 + $0x38] sm:$0xff]  ;;  %p1187_p0 = pneg %p1186_p13  ;;  %p1192_p2 = scmp.lt.s32.totalorder %s1190_s15, %s1184_s24 }
  0x1d   : > { %1082 = vmatprep.subr.bf16.mxu0 %v1081_v4  ;;  %v1093_v12 = vpack.c.bf16 %v352_v11, %v351_v10 }
  0x1e   : > { %1084 = vmatpush3.bf16.msra.mxu0 %v1081_v4  ;;  %p1193_p3 = por %p1192_p2, %p1191_p1 }
  0x1f   : > { %1086 = vmatprep.subr.bf16.mxu0 %v1085_v6 }
  0x20   : > { %p1194_p5 = pnand %p1193_p3, %p1187_p0 }
  0x22   : > { %1088 = vmatpush3.bf16.msra.mxu0 %v1085_v6 }
  0x23   : > { %1090 = vmatprep.subr.bf16.mxu0 %v1089_v9 }
  0x26   : > { %1092 = vmatpush3.bf16.msra.mxu0 %v1089_v9 }
  0x27   : > { %1094 = vmatprep.subr.bf16.mxu0 %v1093_v12 }
  0x2a   : > { %1096 = vmatpush3.bf16.msra.mxu0 %v1093_v12 }
  0x2d   : > { %1023 = vmatmul.mubr.msk.f32.vlgmr.msra.gmra.mrb[0].mxu0 %vm353_vm0, %v310_v13 }
  0x2e   : > { %1025 = vmatprep.mubr.msk.f32.mxu0 %vm353_vm0, %v311_v14  ;;  %v330_v14 = vld [vmem:[%s1556_s5 + $0x18] sm:$0xff] }
  0x31   : > { %1026 = vmatmul.mubr.msk.f32.gmra.mrb[2].mxu0 %vm353_vm0, %v312_v15  ;;  %v331_v15 = vld [vmem:[%s1556_s5 + $0x20] sm:$0xff] }
  0x32   : > { %1028 = vmatprep.mubr.msk.f32.mxu0 %vm353_vm0, %v313_v16  ;;  %v328_v16 = vld [vmem:[%s1556_s5 + $0x8] sm:$0xff] }
  0x35   : > { %1029 = vmatmul.mubr.msk.f32.gmra.mrb[4].mxu0 %vm353_vm0, %v314_v17  ;;  %v332_v17 = vld [vmem:[%s1556_s5 + $0x28] sm:$0xff] }
  0x36   : > { %1031 = vmatprep.mubr.msk.f32.mxu0 %vm353_vm0, %v315_v18  ;;  %v333_v18 = vld [vmem:[%s1556_s5 + $0x30] sm:$0xff] }
  0x39   : > { %1032 = vmatmul.mubr.msk.f32.gmra.mrb[6].mxu0 %vm353_vm0, %v316_v19  ;;  %v334_v19 = vld [vmem:[%s1556_s5 + $0x38] sm:$0xff] }
  0x3a   : > { %1034 = vmatprep.mubr.msk.f32.mxu0 %vm353_vm0, %v317_v20  ;;  %v319_v20 = vld [vmem:[%s1555_s4] sm:$0xff] }
  0x3d   : > { %1035 = vmatmul.mubr.msk.f32.gmra.mrb[8].mxu0 %vm353_vm0, %v318_v21  ;;  %v320_v21 = vld [vmem:[%s1555_s4 + $0x8] sm:$0xff] }
  0x3e   : > { %1047 = vmatprep.mubr.msk.f32.mxu0 %vm529_vm1, %v327_v23  ;;  %v322_v23 = vld [vmem:[%s1555_s4 + $0x18] sm:$0xff] }
 0x100   : > { %v1024_v24 = vpop.f32.mrb[0].mxu0 }
 0x101   : > { %v450_v25 = vpop.f32.mrb[1].mxu0  ;;  %v500_v50 = vmul.f32 %v1024_v24, %v336_v38  ;;  %v515_v51 = vmul.f32 %v1024_v24, %v341_v39  ;;  %v323_v24 = vld [vmem:[%s1555_s4 + $0x20] sm:$0xff] }
 0x102   : > { %v499_v31 = vmul.f32 %v450_v25, %v335_v28  ;;  %v514_v32 = vmul.f32 %v450_v25, %v340_v29  ;;  %v324_v25 = vld [vmem:[%s1555_s4 + $0x28] sm:$0xff] }
 0x104   : > { %v1027_v26 = vpop.f32.mrb[2].mxu0 }
 0x105   : > { %v460_v27 = vpop.f32.mrb[3].mxu0  ;;  %v502_v58 = vmul.f32 %v1027_v26, %v338_v43  ;;  %v517_v59 = vmul.f32 %v1027_v26, %v343_v44  ;;  %v325_v26 = vld [vmem:[%s1555_s4 + $0x30] sm:$0xff] }
 0x106   : > { %v501_v45 = vmul.f32 %v460_v27, %v337_v36  ;;  %v516_v46 = vmul.f32 %v460_v27, %v342_v37  ;;  %v326_v27 = vld [vmem:[%s1555_s4 + $0x38] sm:$0xff] }
 0x108   : > { %v1030_v30 = vpop.f32.mrb[4].mxu0 }
 0x109   : > { %v504_v33 = vmul.f32 %v1030_v30, %v340_v29  ;;  %v519_v34 = vmul.f32 %v1030_v30, %v335_v28  ;;  %v470_v35 = vpop.f32.mrb[5].mxu0 }
 0x10a   : > { %v503_v63 = vmul.f32 %v470_v35, %v339_v52  ;;  %v518_v0 = vmul.f32 %v470_v35, %v344_v53 }
 0x10b   : > { %v509_v40 = vsub.f32 %v499_v31, %v504_v33  ;;  %v524_v41 = vadd.f32 %v519_v34, %v514_v32 }
 0x10c   : > { %v1033_v42 = vpop.f32.mrb[6].mxu0 }
 0x10d   : > { %v506_v47 = vmul.f32 %v1033_v42, %v342_v37  ;;  %v521_v48 = vmul.f32 %v1033_v42, %v337_v36  ;;  %v480_v49 = vpop.f32.mrb[7].mxu0 }
 0x10e   : > { %v505_v54 = vmul.f32 %v480_v49, %v341_v39  ;;  %v520_v55 = vmul.f32 %v480_v49, %v336_v38 }
 0x10f   : > { %v511_v56 = vsub.f32 %v501_v45, %v506_v47  ;;  %v526_v57 = vadd.f32 %v521_v48, %v516_v46 }
 0x110   : > { %v510_v60 = vsub.f32 %v500_v50, %v505_v54  ;;  %v525_v61 = vadd.f32 %v520_v55, %v515_v51  ;;  %v1036_v62 = vpop.f32.mrb[8].mxu0 }
 0x111   : > { %v508_v1 = vmul.f32 %v1036_v62, %v344_v53  ;;  %v523_v2 = vmul.f32 %v1036_v62, %v339_v52  ;;  %v490_v3 = vpop.f32.mrb[9].mxu0 }
 0x112   : > { %v1097_v4 = vpack.c.bf16 %v525_v61, %v524_v41  ;;  %v507_v5 = vmul.f32 %v490_v3, %v343_v44  ;;  %v522_v6 = vmul.f32 %v490_v3, %v338_v43  ;;  %v1105_v7 = vpack.c.bf16 %v510_v60, %v509_v40 }
 0x113   : > { %v513_v8 = vsub.f32 %v503_v63, %v508_v1  ;;  %v528_v9 = vadd.f32 %v523_v2, %v518_v0 }
 0x114   : > { %v512_v10 = vsub.f32 %v502_v58, %v507_v5  ;;  %v527_v11 = vadd.f32 %v522_v6, %v517_v59  ;;  %1098 = vmatprep.subr.bf16.mxu0 %v1097_v4  ;;  %1113 = vmatprep.subr.bf16.mxu1 %v1097_v4 }
 0x115   : > { %1100 = vmatpush3.bf16.msra.mxu0 %v1097_v4  ;;  %1116 = vmatpush3.bf16.msra.mxu1 %v1097_v4 }
 0x116   : > { %v1101_v12 = vpack.c.bf16 %v527_v11, %v526_v57  ;;  %v1109_v13 = vpack.c.bf16 %v512_v10, %v511_v56 }
 0x118   : > { %1102 = vmatprep.subr.bf16.mxu0 %v1101_v12  ;;  %1114 = vmatprep.subr.bf16.mxu1 %v1101_v12 }
 0x119   : > { %1104 = vmatpush3.bf16.msra.mxu0 %v1101_v12  ;;  %1117 = vmatpush3.bf16.msra.mxu1 %v1101_v12 }
 0x11a   : > { %1045 = vmatprep.subr.mxu0 %v528_v9  ;;  %1115 = vmatprep.subr.mxu1 %v528_v9 }
 0x11d   : > { %1046 = vmatpush3.msra.mxu0 %v528_v9  ;;  %1118 = vmatpush3.msra.mxu1 %v528_v9 }
 0x11e   : > { %1051 = vmatmul.mubr.msk.f32.vlgmr.msra.gmra.mrb[0].mxu1 %vm529_vm1, %v330_v14  ;;  %1106 = vmatprep.subr.bf16.mxu1 %v1105_v7 }
 0x11f   : > { %1108 = vmatpush3.bf16.msra.mxu1 %v1105_v7  ;;  %1053 = vmatprep.mubr.msk.f32.mxu1 %vm529_vm1, %v331_v15 }
 0x120   : > { %1110 = vmatprep.subr.bf16.mxu1 %v1109_v13  ;;  %1048 = vmatmul.mubr.msk.f32.vlgmr.msra.gmra.mrb[10].mxu0 %vm529_vm1, %v328_v16 }
 0x122   : > { %1054 = vmatmul.mubr.msk.f32.gmra.mrb[2].mxu1 %vm529_vm1, %v332_v17 }
 0x123   : > { %1112 = vmatpush3.bf16.msra.mxu1 %v1109_v13  ;;  %1056 = vmatprep.mubr.msk.f32.mxu1 %vm529_vm1, %v333_v18 }
 0x124   : > { %1067 = vmatprep.subr.mxu1 %v513_v8 }
 0x126   : > { %1057 = vmatmul.mubr.msk.f32.gmra.mrb[4].mxu1 %vm529_vm1, %v334_v19 }
 0x127   : > { %1068 = vmatpush3.msra.mxu1 %v513_v8  ;;  %1069 = vmatprep.mubr.msk.f32.mxu1 %vm529_vm1, %v319_v20 }
 0x12a   : > { %1070 = vmatmul.mubr.msk.f32.vlgmr.msra.gmra.mrb[6].mxu1 %vm529_vm1, %v320_v21 }
 0x12b   : > { %1072 = vmatprep.mubr.msk.f32.mxu1 %vm529_vm1, %v321_v22 }
 0x12e   : > { %1073 = vmatmul.mubr.msk.f32.gmra.mrb[0].mxu1 %vm529_vm1, %v322_v23 }
 0x12f   : > { %1075 = vmatprep.mubr.msk.f32.mxu1 %vm529_vm1, %v323_v24 }
 0x132   : > { %1076 = vmatmul.mubr.msk.f32.gmra.mrb[2].mxu1 %vm529_vm1, %v324_v25 }
 0x133   : > { %1078 = vmatprep.mubr.msk.f32.mxu1 %vm529_vm1, %v325_v26 }
 0x136   : > { %1079 = vmatmul.mubr.msk.f32.gmra.mrb[4].mxu1 %vm529_vm1, %v326_v27 }
 0x1f3   : > { %v1049_v28 = vpop.f32.mrb[10].mxu0 }
 0x1f4   : > { %v620_v29 = vpop.f32.mrb[11].mxu0 }
 0x1fd   : > { %v1071_v30 = vpop.f32.mrb[6].mxu1 }
 0x1fe   : > { %v755_v31 = vadd.f32 %v1071_v30, %v1049_v28  ;;  %v749_v32 = vpop.f32.mrb[7].mxu1 }
 0x1ff   : > { %v750_v33 = vadd.f32 %v749_v32, %v620_v29 }
 0x200   : > { %789 = vst [vmem:[%s292_s20 + $0x8] sm:$0xff] %v755_v31 }
 0x201   : > { %788 = vst [vmem:[%s292_s20] sm:$0xff] %v750_v33  ;;  %v1074_v34 = vpop.f32.mrb[0].mxu1 }
 0x202   : > { %791 = vst [vmem:[%s292_s20 + $0x18] sm:$0xff] %v1074_v34  ;;  %v759_v35 = vpop.f32.mrb[1].mxu1 }
 0x203   : > { %790 = vst [vmem:[%s292_s20 + $0x10] sm:$0xff] %v759_v35 }
 0x205   : > { %v1077_v36 = vpop.f32.mrb[2].mxu1 }
 0x206   : > { %793 = vst [vmem:[%s292_s20 + $0x28] sm:$0xff] %v1077_v36  ;;  %v769_v37 = vpop.f32.mrb[3].mxu1 }
 0x207   : > { %792 = vst [vmem:[%s292_s20 + $0x20] sm:$0xff] %v769_v37 }
 0x209   : > { %v1080_v38 = vpop.f32.mrb[4].mxu1 }
 0x20a   : > { %795 = vst [vmem:[%s292_s20 + $0x38] sm:$0xff] %v1080_v38  ;;  %v779_v39 = vpop.f32.mrb[5].mxu1 }
 0x20b   : > { %794 = vst [vmem:[%s292_s20 + $0x30] sm:$0xff] %v779_v39 }
 0x20c   : > { %1197 = shalt.err (!%p1194_p5)
}
 0x20d   : > { %s1198_s16 = scalar_lea.hbm %s1501_s11, 1024  ;;  %s1202_s19 = scalar_lea.hbm %s1557_s6, 2048 }
 0x20e   : > { %p1199_p6 = scmp.ne.s32.totalorder %s1501_s11, %s1198_s16  ;;  %p1203_p10 = scmp.lt.u32.totalorder %s1501_s11, %s1557_s6 }
 0x20f   : > { %p1204_p11 = scmp.lt.u32.totalorder %s1202_s19, %s1198_s16  ;;  %p1206_p13 = scmp.lt.u32.totalorder %s1198_s16, %s1501_s11 }
 0x210   : > { %p1200_p7 = pnand %p1199_p6, %p1342_p4 }
 0x211   : > { %p1205_p12 = por %p1204_p11, %p1203_p10 }
 0x212   : > { %p1201_p9 = pneg %p1200_p7 }
 0x213   : > { %p1207_p0 = por %p1206_p13, %p1205_p12 }
 0x215   : > { %p1208_p1 = pnand %p1207_p0, %p1201_p9 }
 0x217   : > { %1211 = shalt.err (!%p1208_p1)
}
 0x218   : > { %s1265_s30 = smov 128   ;;  %s1266_s8 = smov 8  }
 0x219   : > { %1127 = dma.vmem_to_hbm [thread:$0]  (%p1342_p4), %s1503_s28, 1024, %s1501_s11, %s1505_s12, %s1265_s30, %s1265_s30, %s1266_s8  }
 0x21a PF: > { %p1133_p2 = scmp.ge.s32.totalorder %s1262_s26, 2  ;;  %s826_s24 = sand.u32 1, %s1242_s21  }
 0x21b   : > { %s827_s13 = scalar_lea.sflag [#allocation3], %s826_s24 }
 0x21c   : > { %p1130_p3 = pnand %p1133_p2, %p1349_p8 }
 0x21e   : > { %1237 = dma.done.wait (!%p1130_p3), %s827_s13, 1024  }
 0x21f   : > { %1239 = vsyncadd (!%p1130_p3), %s827_s13, 4294966272  ;;  %s19_s26 = sadd.s32 1, %s1262_s26   ;;  %s1560_s21 = smov %s1246_s22 }
 0x220   : > { %p16_p5 = scmp.ge.s32.totalorder %s19_s26, 4   ;;  %s1561_s22 = smov %s1250_s23 }
 0x221   : > { %s1562_s23 = smov %s1355_s10  ;;  %s1563_s24 = smov %s1258_s25 }
 0x222   : > { %s1564_s25 = smov %s1566_s29  ;;  %18 = sbr.rel (!%p16_p5) target bundleno = 4 (0x4), region = 85 }
 0x229   :  { %832 = vsyncpa [#allocation3], 1 }
 0x22a   :  { %834 = vsyncpa [#allocation3 + $0x1], 1 }

</bundles_post_ra>
